<compile_context>
chip_gen: v6e
topology: v6e:2x2x1
jax: 0.10.0
libtpu: 0.0.40
codegen_flags: <defaults>
</compile_context>

<pallas_src>
import functools

import jax
import jax.numpy as jnp
from jax.experimental import pallas as pl
from jax.experimental.pallas import tpu as pltpu


def _round_up(x, m):
    return (x + m - 1) // m * m


def _grum_recurrent_kernel(xproj_ref, w_hzr_ref, w_hh_ref, h0_hbm_ref,
                           out_ref, h_scratch, init_sem):
    """One grid step = Tb timesteps of the GRUM recurrence."""
    hp = h_scratch.shape[-1]
    w_dtype = w_hzr_ref.dtype

    # Load H0 into the carry scratch exactly once (grid step 0).
    @pl.when(pl.program_id(0) == 0)
    def _():
        cp = pltpu.make_async_copy(h0_hbm_ref, h_scratch, init_sem.at[0])
        cp.start()
        cp.wait()

    def step(i, h):
        # x-side projections with beta and the gate biases already folded in.
        xp = xproj_ref[i].astype(jnp.float32)                       # (Bp, 3Hp)
        # Fused z/r hidden matmul: one (Bp,Hp)@(Hp,2Hp) MXU call.
        hzr = jnp.dot(h.astype(w_dtype), w_hzr_ref[...],
                      preferred_element_type=jnp.float32)           # (Bp, 2Hp)
        z = jax.nn.sigmoid(xp[:, :hp] + hzr[:, :hp])
        r = jax.nn.sigmoid(xp[:, hp:2 * hp] + hzr[:, hp:])
        h_cand = jnp.tanh(
            xp[:, 2 * hp:]
            + jnp.dot((r * h).astype(w_dtype), w_hh_ref[...],
                      preferred_element_type=jnp.float32))
        h_new = z * h + (1.0 - z) * h_cand
        out_ref[i] = h_new.astype(out_ref.dtype)
        return h_new

    h_final = jax.lax.fori_loop(0, out_ref.shape[0], step, h_scratch[...],
                                unroll=True)
    h_scratch[...] = h_final


@functools.partial(jax.jit, static_argnames=("time_block", "compute_dtype"))
def grum_forward(X, Delta, H0, params, *, time_block=4,
                 compute_dtype=jnp.float32):
    """GRUM forward. X, Delta: (T, B, I); H0: (B, H) or None. Returns (T*B, H)."""
    T, B, I = X.shape
    H = params["W_xz"].shape[1]
    f32 = jnp.float32

    Bp = _round_up(B, 8)           # sublane alignment
    Hp = _round_up(H, 128)         # lane alignment -> unmasked stores
    Tb = max(1, min(time_block, T))
    Tp = _round_up(T, Tb)

    def pad2(a, rows, cols):
        a = a.astype(f32)
        return jnp.pad(a, ((0, rows - a.shape[0]), (0, cols - a.shape[1])))

    # --- pad + fuse weights --------------------------------------------------
    Wx3 = jnp.concatenate([pad2(params["W_xz"], I, Hp),
                           pad2(params["W_xr"], I, Hp),
                           pad2(params["W_xh"], I, Hp)], axis=1)     # (I, 3Hp)
    b3 = jnp.concatenate([pad2(params["b_z"], 1, Hp),
                          pad2(params["b_r"], 1, Hp),
                          pad2(params["b_h"], 1, Hp)], axis=1)       # (1, 3Hp)
    W_beta = pad2(params["W_beta"], I, Hp)
    b_beta = pad2(params["b_beta"], 1, Hp)
    W_hzr = jnp.concatenate([pad2(params["W_hz"], Hp, Hp),
                             pad2(params["W_hr"], Hp, Hp)], axis=1)  # (Hp, 2Hp)
    W_hh = pad2(params["W_hh"], Hp, Hp)                              # (Hp, Hp)

    # --- hoisted time-independent projections (one big MXU-shaped matmul) ----
    Xf = X.reshape(T * B, I).astype(f32)
    Df = Delta.reshape(T * B, I).astype(f32)
    beta = jnp.exp(jnp.minimum(0.0, Df @ W_beta + b_beta))           # (T*B, Hp)
    xproj = Xf @ Wx3                                                 # (T*B, 3Hp)
    xproj = xproj * jnp.concatenate([beta, beta, beta], axis=1) + b3
    xproj = xproj.reshape(T, B, 3 * Hp)
    # Zero-pad batch and time: padded rows/steps stay exactly zero through the
    # recurrence (all padded weight/bias entries are zero), so no pollution.
    xproj = jnp.pad(xproj, ((0, Tp - T), (0, Bp - B), (0, 0)))
    xproj = xproj.astype(compute_dtype)

    if H0 is None:
        H0p = jnp.zeros((Bp, Hp), f32)
    else:
        H0p = jnp.pad(H0.astype(f32), ((0, Bp - B), (0, Hp - H)))

    out = pl.pallas_call(
        _grum_recurrent_kernel,
        out_shape=jax.ShapeDtypeStruct((Tp, Bp, Hp), f32),
        grid_spec=pltpu.PrefetchScalarGridSpec(
            num_scalar_prefetch=0,
            grid=(Tp // Tb,),
            in_specs=[
                pl.BlockSpec((Tb, Bp, 3 * Hp), lambda t: (t, 0, 0)),  # XPROJ
                pl.BlockSpec((Hp, 2 * Hp), lambda t: (0, 0)),         # W_h[z|r]
                pl.BlockSpec((Hp, Hp), lambda t: (0, 0)),             # W_hh
                pl.BlockSpec(memory_space=pl.ANY),                    # H0 (HBM)
            ],
            out_specs=pl.BlockSpec((Tb, Bp, Hp), lambda t: (t, 0, 0)),
            scratch_shapes=[
                pltpu.VMEM((Bp, Hp), f32),        # hidden-state carry
                pltpu.SemaphoreType.DMA((1,)),    # H0 init DMA
            ],
        ),
        compiler_params=pltpu.CompilerParams(
            dimension_semantics=("arbitrary",),   # sequential recurrence
            vmem_limit_bytes=32 * 1024 * 1024,
        ),
    )(xproj, W_hzr.astype(compute_dtype), W_hh.astype(compute_dtype), H0p)

    # torch.cat((H, H_new), dim=0) over the time loop -> (T*B, H)
    return out[:T, :B, :H].reshape(T * B, H)


def grum_reference(X, Delta, H0, params):
    """Pure-JAX reference mirroring the PyTorch forward exactly."""
    T, B, I = X.shape
    H = params["W_xz"].shape[1]
    h = jnp.zeros((B, H), jnp.float32) if H0 is None else H0.astype(jnp.float32)
    outs = []
    for t in range(T):
        x, d = X[t], Delta[t]
        beta = jnp.exp(jnp.minimum(0.0, d @ params["W_beta"] + params["b_beta"]))
        z = jax.nn.sigmoid(x @ params["W_xz"] * beta + h @ params["W_hz"] + params["b_z"])
        r = jax.nn.sigmoid(x @ params["W_xr"] * beta + h @ params["W_hr"] + params["b_r"])
        h_tilde = jnp.tanh(x @ params["W_xh"] * beta + (r * h) @ params["W_hh"] + params["b_h"])
        h = z * h + (1.0 - z) * h_tilde
        outs.append(h)
    return jnp.concatenate(outs, axis=0)


def init_params(key, num_inputs, num_hiddens):
    ks = jax.random.split(key, 7)
    n = lambda k, shape: 0.01 * jax.random.normal(k, shape, dtype=jnp.float32)
    return {
        "W_xz": n(ks[0], (num_inputs, num_hiddens)),
        "W_hz": n(ks[1], (num_hiddens, num_hiddens)),
        "b_z": jnp.zeros((1, num_hiddens), jnp.float32),
        "W_xr": n(ks[2], (num_inputs, num_hiddens)),
        "W_hr": n(ks[3], (num_hiddens, num_hiddens)),
        "b_r": jnp.zeros((1, num_hiddens), jnp.float32),
        "W_xh": n(ks[4], (num_inputs, num_hiddens)),
        "W_hh": n(ks[5], (num_hiddens, num_hiddens)),
        "b_h": jnp.zeros((1, num_hiddens), jnp.float32),
        "W_beta": n(ks[6], (num_inputs, num_hiddens)),
        "b_beta": jnp.zeros((1, num_hiddens), jnp.float32),
    }


if __name__ == "__main__":
    T, B, I, H = 10, 4, 16, 32
    key = jax.random.PRNGKey(0)
    kx, kd, kh, kp = jax.random.split(key, 4)

    X = jax.random.normal(kx, (T, B, I), dtype=jnp.float32)
    Delta = jax.random.uniform(kd, (T, B, I), dtype=jnp.float32)
    params = init_params(kp, I, H)

    # H=None -> zeros init, exactly like the PyTorch module.
    ref = grum_reference(X, Delta, None, params)

    out_f32 = jax.block_until_ready(
        grum_forward(X, Delta, None, params, time_block=4,
                     compute_dtype=jnp.float32))
    assert out_f32.shape == (T * B, H)
    assert jnp.allclose(out_f32, ref, atol=1e-5, rtol=1e-5), "f32 mismatch vs reference"

    # Non-zero initial hidden state exercises the H0 init-DMA path.
    H0 = 0.1 * jax.random.normal(kh, (B, H), dtype=jnp.float32)
    ref_h0 = grum_reference(X, Delta, H0, params)
    out_h0 = jax.block_until_ready(
        grum_forward(X, Delta, H0, params, time_block=4,
                     compute_dtype=jnp.float32))
    assert jnp.allclose(out_h0, ref_h0, atol=1e-5, rtol=1e-5), "H0 mismatch vs reference"

    # bf16 weights / hoisted projections (MXU-native path), f32 carry + gates.
    out_bf16 = jax.block_until_ready(
        grum_forward(X, Delta, None, params, time_block=4,
                     compute_dtype=jnp.bfloat16))
    assert float(jnp.max(jnp.abs(out_bf16 - ref))) < 2e-3, "bf16 drift too large"

    print("KERNEL_OK")
</pallas_src>

<mosaic_0001>
module attributes {stable_mosaic.version = 11 : i64} {
  func.func @_grum_recurrent_kernel(%arg0: i32, %arg1: memref<4x8x384xf32, #tpu.memory_space<vmem>>, %arg2: memref<128x256xf32, #tpu.memory_space<vmem>>, %arg3: memref<128x128xf32, #tpu.memory_space<vmem>>, %arg4: memref<8x128xf32, #tpu.memory_space<any>>, %arg5: memref<4x8x128xf32, #tpu.memory_space<vmem>>, %arg6: memref<8x128xf32, #tpu.memory_space<vmem>>, %arg7: memref<1x!tpu.dma_semaphore, #tpu.memory_space<semaphore_mem>>) attributes {dimension_semantics = [#tpu.dimension_semantics<arbitrary>], iteration_bounds = array<i64: 3>, scalar_prefetch = 0 : i64, scratch_operands = 2 : i64, tpu.core_type = #tpu.core_type<tc>, window_params = [{transform_indices = @transform_0, window_bounds = array<i64: 4, 8, 384>}, {pipeline_mode = #tpu.pipeline_mode<synchronous>, transform_indices = @transform_1, window_bounds = array<i64: 128, 256>}, {pipeline_mode = #tpu.pipeline_mode<synchronous>, transform_indices = @transform_2, window_bounds = array<i64: 128, 128>}, {}, {transform_indices = @transform_4, window_bounds = array<i64: 4, 8, 128>}]} {
    %c0_i32 = arith.constant 0 : i32
    %0 = arith.cmpi eq, %arg0, %c0_i32 : i32
    %1 = arith.extui %0 : i1 to i32
    %c0_i32_0 = arith.constant 0 : i32
    %2 = arith.cmpi ne, %1, %c0_i32_0 : i32
    scf.if %2 {
      %c0_i32_56 = arith.constant 0 : i32
      %149 = tpu.memref_slice %arg7[%c0_i32_56] : memref<1x!tpu.dma_semaphore, #tpu.memory_space<semaphore_mem>> -> memref<1x!tpu.dma_semaphore, #tpu.memory_space<semaphore_mem>>
      %150 = tpu.memref_squeeze %149 : memref<1x!tpu.dma_semaphore, #tpu.memory_space<semaphore_mem>> -> memref<!tpu.dma_semaphore, #tpu.memory_space<semaphore_mem>>
      tpu.enqueue_dma source(%arg4 : memref<8x128xf32, #tpu.memory_space<any>>) target(%arg6 : memref<8x128xf32, #tpu.memory_space<vmem>>) target_semaphore(%150 : memref<!tpu.dma_semaphore, #tpu.memory_space<semaphore_mem>>)
      %c0_i32_57 = arith.constant 0 : i32
      %151 = tpu.memref_slice %arg7[%c0_i32_57] : memref<1x!tpu.dma_semaphore, #tpu.memory_space<semaphore_mem>> -> memref<1x!tpu.dma_semaphore, #tpu.memory_space<semaphore_mem>>
      %152 = tpu.memref_squeeze %151 : memref<1x!tpu.dma_semaphore, #tpu.memory_space<semaphore_mem>> -> memref<!tpu.dma_semaphore, #tpu.memory_space<semaphore_mem>>
      tpu.wait_dma2 semaphore(%152 : memref<!tpu.dma_semaphore, #tpu.memory_space<semaphore_mem>>) src(%arg4 : memref<8x128xf32, #tpu.memory_space<any>>) dst(%arg6 : memref<8x128xf32, #tpu.memory_space<vmem>>)
    } else {
    }
    %c0 = arith.constant 0 : index
    %c0_1 = arith.constant 0 : index
    %3 = vector.load %arg6[%c0, %c0_1] : memref<8x128xf32, #tpu.memory_space<vmem>>, vector<8x128xf32>
    %c0_i32_2 = arith.constant 0 : i32
    %4 = arith.index_cast %c0_i32_2 : i32 to index
    %c0_3 = arith.constant 0 : index
    %c0_4 = arith.constant 0 : index
    %5 = vector.load %arg1[%4, %c0_3, %c0_4] : memref<4x8x384xf32, #tpu.memory_space<vmem>>, vector<1x8x384xf32>
    %6 = vector.shape_cast %5 : vector<1x8x384xf32> to vector<8x384xf32>
    %c0_5 = arith.constant 0 : index
    %c0_6 = arith.constant 0 : index
    %7 = vector.load %arg2[%c0_5, %c0_6] : memref<128x256xf32, #tpu.memory_space<vmem>>, vector<128x256xf32>
    %cst = arith.constant dense<0.000000e+00> : vector<8x256xf32>
    %8 = tpu.matmul %3, %7, %cst {dimension_numbers = #tpu.dot_dimension_numbers<[1], [0], [0], [1], [0, 0, 1, 1], [], []>} : vector<8x128xf32>, vector<128x256xf32>, vector<8x256xf32> -> vector<8x256xf32>
    %9 = vector.extract_strided_slice %6 {offsets = [0, 0], sizes = [8, 128], strides = [1, 1]} : vector<8x384xf32> to vector<8x128xf32>
    %10 = vector.extract_strided_slice %8 {offsets = [0, 0], sizes = [8, 128], strides = [1, 1]} : vector<8x256xf32> to vector<8x128xf32>
    %11 = arith.addf %9, %10 : vector<8x128xf32>
    %12 = arith.negf %11 : vector<8x128xf32>
    %13 = math.exp %12 : vector<8x128xf32>
    %cst_7 = arith.constant 1.000000e+00 : f32
    %14 = vector.broadcast %cst_7 : f32 to vector<8x128xf32>
    %15 = arith.addf %14, %13 : vector<8x128xf32>
    %16 = arith.divf %14, %15 : vector<8x128xf32>
    %17 = vector.extract_strided_slice %6 {offsets = [0, 128], sizes = [8, 128], strides = [1, 1]} : vector<8x384xf32> to vector<8x128xf32>
    %18 = vector.extract_strided_slice %8 {offsets = [0, 128], sizes = [8, 128], strides = [1, 1]} : vector<8x256xf32> to vector<8x128xf32>
    %19 = arith.addf %17, %18 : vector<8x128xf32>
    %20 = arith.negf %19 : vector<8x128xf32>
    %21 = math.exp %20 : vector<8x128xf32>
    %cst_8 = arith.constant 1.000000e+00 : f32
    %22 = vector.broadcast %cst_8 : f32 to vector<8x128xf32>
    %23 = arith.addf %22, %21 : vector<8x128xf32>
    %24 = arith.divf %22, %23 : vector<8x128xf32>
    %25 = vector.extract_strided_slice %6 {offsets = [0, 256], sizes = [8, 128], strides = [1, 1]} : vector<8x384xf32> to vector<8x128xf32>
    %26 = arith.mulf %24, %3 : vector<8x128xf32>
    %c0_9 = arith.constant 0 : index
    %c0_10 = arith.constant 0 : index
    %27 = vector.load %arg3[%c0_9, %c0_10] : memref<128x128xf32, #tpu.memory_space<vmem>>, vector<128x128xf32>
    %cst_11 = arith.constant dense<0.000000e+00> : vector<8x128xf32>
    %28 = tpu.matmul %26, %27, %cst_11 {dimension_numbers = #tpu.dot_dimension_numbers<[1], [0], [0], [1], [0, 0, 1, 1], [], []>} : vector<8x128xf32>, vector<128x128xf32>, vector<8x128xf32> -> vector<8x128xf32>
    %29 = arith.addf %25, %28 : vector<8x128xf32>
    %30 = math.tanh %29 : vector<8x128xf32>
    %31 = arith.mulf %16, %3 : vector<8x128xf32>
    %cst_12 = arith.constant 1.000000e+00 : f32
    %32 = vector.broadcast %cst_12 : f32 to vector<8x128xf32>
    %33 = arith.subf %32, %16 : vector<8x128xf32>
    %34 = arith.mulf %33, %30 : vector<8x128xf32>
    %35 = arith.addf %31, %34 : vector<8x128xf32>
    %36 = arith.index_cast %c0_i32_2 : i32 to index
    %c0_13 = arith.constant 0 : index
    %c0_14 = arith.constant 0 : index
    %37 = vector.load %arg5[%36, %c0_13, %c0_14] : memref<4x8x128xf32, #tpu.memory_space<vmem>>, vector<1x8x128xf32>
    %38 = vector.shape_cast %37 : vector<1x8x128xf32> to vector<8x128xf32>
    %39 = vector.shape_cast %35 : vector<8x128xf32> to vector<1x8x128xf32>
    tpu.vector_store %arg5[%36, %c0_13, %c0_14], %39 {strides = array<i32>} : memref<4x8x128xf32, #tpu.memory_space<vmem>>, vector<1x8x128xf32>,
    %c1_i32 = arith.constant 1 : i32
    %40 = arith.index_cast %c1_i32 : i32 to index
    %c0_15 = arith.constant 0 : index
    %c0_16 = arith.constant 0 : index
    %41 = vector.load %arg1[%40, %c0_15, %c0_16] : memref<4x8x384xf32, #tpu.memory_space<vmem>>, vector<1x8x384xf32>
    %42 = vector.shape_cast %41 : vector<1x8x384xf32> to vector<8x384xf32>
    %c0_17 = arith.constant 0 : index
    %c0_18 = arith.constant 0 : index
    %43 = vector.load %arg2[%c0_17, %c0_18] : memref<128x256xf32, #tpu.memory_space<vmem>>, vector<128x256xf32>
    %cst_19 = arith.constant dense<0.000000e+00> : vector<8x256xf32>
    %44 = tpu.matmul %35, %43, %cst_19 {dimension_numbers = #tpu.dot_dimension_numbers<[1], [0], [0], [1], [0, 0, 1, 1], [], []>} : vector<8x128xf32>, vector<128x256xf32>, vector<8x256xf32> -> vector<8x256xf32>
    %45 = vector.extract_strided_slice %42 {offsets = [0, 0], sizes = [8, 128], strides = [1, 1]} : vector<8x384xf32> to vector<8x128xf32>
    %46 = vector.extract_strided_slice %44 {offsets = [0, 0], sizes = [8, 128], strides = [1, 1]} : vector<8x256xf32> to vector<8x128xf32>
    %47 = arith.addf %45, %46 : vector<8x128xf32>
    %48 = arith.negf %47 : vector<8x128xf32>
    %49 = math.exp %48 : vector<8x128xf32>
    %cst_20 = arith.constant 1.000000e+00 : f32
    %50 = vector.broadcast %cst_20 : f32 to vector<8x128xf32>
    %51 = arith.addf %50, %49 : vector<8x128xf32>
    %52 = arith.divf %50, %51 : vector<8x128xf32>
    %53 = vector.extract_strided_slice %42 {offsets = [0, 128], sizes = [8, 128], strides = [1, 1]} : vector<8x384xf32> to vector<8x128xf32>
    %54 = vector.extract_strided_slice %44 {offsets = [0, 128], sizes = [8, 128], strides = [1, 1]} : vector<8x256xf32> to vector<8x128xf32>
    %55 = arith.addf %53, %54 : vector<8x128xf32>
    %56 = arith.negf %55 : vector<8x128xf32>
    %57 = math.exp %56 : vector<8x128xf32>
    %cst_21 = arith.constant 1.000000e+00 : f32
    %58 = vector.broadcast %cst_21 : f32 to vector<8x128xf32>
    %59 = arith.addf %58, %57 : vector<8x128xf32>
    %60 = arith.divf %58, %59 : vector<8x128xf32>
    %61 = vector.extract_strided_slice %42 {offsets = [0, 256], sizes = [8, 128], strides = [1, 1]} : vector<8x384xf32> to vector<8x128xf32>
    %62 = arith.mulf %60, %35 : vector<8x128xf32>
    %c0_22 = arith.constant 0 : index
    %c0_23 = arith.constant 0 : index
    %63 = vector.load %arg3[%c0_22, %c0_23] : memref<128x128xf32, #tpu.memory_space<vmem>>, vector<128x128xf32>
    %cst_24 = arith.constant dense<0.000000e+00> : vector<8x128xf32>
    %64 = tpu.matmul %62, %63, %cst_24 {dimension_numbers = #tpu.dot_dimension_numbers<[1], [0], [0], [1], [0, 0, 1, 1], [], []>} : vector<8x128xf32>, vector<128x128xf32>, vector<8x128xf32> -> vector<8x128xf32>
    %65 = arith.addf %61, %64 : vector<8x128xf32>
    %66 = math.tanh %65 : vector<8x128xf32>
    %67 = arith.mulf %52, %35 : vector<8x128xf32>
    %cst_25 = arith.constant 1.000000e+00 : f32
    %68 = vector.broadcast %cst_25 : f32 to vector<8x128xf32>
    %69 = arith.subf %68, %52 : vector<8x128xf32>
    %70 = arith.mulf %69, %66 : vector<8x128xf32>
    %71 = arith.addf %67, %70 : vector<8x128xf32>
    %72 = arith.index_cast %c1_i32 : i32 to index
    %c0_26 = arith.constant 0 : index
    %c0_27 = arith.constant 0 : index
    %73 = vector.load %arg5[%72, %c0_26, %c0_27] : memref<4x8x128xf32, #tpu.memory_space<vmem>>, vector<1x8x128xf32>
    %74 = vector.shape_cast %73 : vector<1x8x128xf32> to vector<8x128xf32>
    %75 = vector.shape_cast %71 : vector<8x128xf32> to vector<1x8x128xf32>
    tpu.vector_store %arg5[%72, %c0_26, %c0_27], %75 {strides = array<i32>} : memref<4x8x128xf32, #tpu.memory_space<vmem>>, vector<1x8x128xf32>,
    %c2_i32 = arith.constant 2 : i32
    %76 = arith.index_cast %c2_i32 : i32 to index
    %c0_28 = arith.constant 0 : index
    %c0_29 = arith.constant 0 : index
    %77 = vector.load %arg1[%76, %c0_28, %c0_29] : memref<4x8x384xf32, #tpu.memory_space<vmem>>, vector<1x8x384xf32>
    %78 = vector.shape_cast %77 : vector<1x8x384xf32> to vector<8x384xf32>
    %c0_30 = arith.constant 0 : index
    %c0_31 = arith.constant 0 : index
    %79 = vector.load %arg2[%c0_30, %c0_31] : memref<128x256xf32, #tpu.memory_space<vmem>>, vector<128x256xf32>
    %cst_32 = arith.constant dense<0.000000e+00> : vector<8x256xf32>
    %80 = tpu.matmul %71, %79, %cst_32 {dimension_numbers = #tpu.dot_dimension_numbers<[1], [0], [0], [1], [0, 0, 1, 1], [], []>} : vector<8x128xf32>, vector<128x256xf32>, vector<8x256xf32> -> vector<8x256xf32>
    %81 = vector.extract_strided_slice %78 {offsets = [0, 0], sizes = [8, 128], strides = [1, 1]} : vector<8x384xf32> to vector<8x128xf32>
    %82 = vector.extract_strided_slice %80 {offsets = [0, 0], sizes = [8, 128], strides = [1, 1]} : vector<8x256xf32> to vector<8x128xf32>
    %83 = arith.addf %81, %82 : vector<8x128xf32>
    %84 = arith.negf %83 : vector<8x128xf32>
    %85 = math.exp %84 : vector<8x128xf32>
    %cst_33 = arith.constant 1.000000e+00 : f32
    %86 = vector.broadcast %cst_33 : f32 to vector<8x128xf32>
    %87 = arith.addf %86, %85 : vector<8x128xf32>
    %88 = arith.divf %86, %87 : vector<8x128xf32>
    %89 = vector.extract_strided_slice %78 {offsets = [0, 128], sizes = [8, 128], strides = [1, 1]} : vector<8x384xf32> to vector<8x128xf32>
    %90 = vector.extract_strided_slice %80 {offsets = [0, 128], sizes = [8, 128], strides = [1, 1]} : vector<8x256xf32> to vector<8x128xf32>
    %91 = arith.addf %89, %90 : vector<8x128xf32>
    %92 = arith.negf %91 : vector<8x128xf32>
    %93 = math.exp %92 : vector<8x128xf32>
    %cst_34 = arith.constant 1.000000e+00 : f32
    %94 = vector.broadcast %cst_34 : f32 to vector<8x128xf32>
    %95 = arith.addf %94, %93 : vector<8x128xf32>
    %96 = arith.divf %94, %95 : vector<8x128xf32>
    %97 = vector.extract_strided_slice %78 {offsets = [0, 256], sizes = [8, 128], strides = [1, 1]} : vector<8x384xf32> to vector<8x128xf32>
    %98 = arith.mulf %96, %71 : vector<8x128xf32>
    %c0_35 = arith.constant 0 : index
    %c0_36 = arith.constant 0 : index
    %99 = vector.load %arg3[%c0_35, %c0_36] : memref<128x128xf32, #tpu.memory_space<vmem>>, vector<128x128xf32>
    %cst_37 = arith.constant dense<0.000000e+00> : vector<8x128xf32>
    %100 = tpu.matmul %98, %99, %cst_37 {dimension_numbers = #tpu.dot_dimension_numbers<[1], [0], [0], [1], [0, 0, 1, 1], [], []>} : vector<8x128xf32>, vector<128x128xf32>, vector<8x128xf32> -> vector<8x128xf32>
    %101 = arith.addf %97, %100 : vector<8x128xf32>
    %102 = math.tanh %101 : vector<8x128xf32>
    %103 = arith.mulf %88, %71 : vector<8x128xf32>
    %cst_38 = arith.constant 1.000000e+00 : f32
    %104 = vector.broadcast %cst_38 : f32 to vector<8x128xf32>
    %105 = arith.subf %104, %88 : vector<8x128xf32>
    %106 = arith.mulf %105, %102 : vector<8x128xf32>
    %107 = arith.addf %103, %106 : vector<8x128xf32>
    %108 = arith.index_cast %c2_i32 : i32 to index
    %c0_39 = arith.constant 0 : index
    %c0_40 = arith.constant 0 : index
    %109 = vector.load %arg5[%108, %c0_39, %c0_40] : memref<4x8x128xf32, #tpu.memory_space<vmem>>, vector<1x8x128xf32>
    %110 = vector.shape_cast %109 : vector<1x8x128xf32> to vector<8x128xf32>
    %111 = vector.shape_cast %107 : vector<8x128xf32> to vector<1x8x128xf32>
    tpu.vector_store %arg5[%108, %c0_39, %c0_40], %111 {strides = array<i32>} : memref<4x8x128xf32, #tpu.memory_space<vmem>>, vector<1x8x128xf32>,
    %c3_i32 = arith.constant 3 : i32
    %112 = arith.index_cast %c3_i32 : i32 to index
    %c0_41 = arith.constant 0 : index
    %c0_42 = arith.constant 0 : index
    %113 = vector.load %arg1[%112, %c0_41, %c0_42] : memref<4x8x384xf32, #tpu.memory_space<vmem>>, vector<1x8x384xf32>
    %114 = vector.shape_cast %113 : vector<1x8x384xf32> to vector<8x384xf32>
    %c0_43 = arith.constant 0 : index
    %c0_44 = arith.constant 0 : index
    %115 = vector.load %arg2[%c0_43, %c0_44] : memref<128x256xf32, #tpu.memory_space<vmem>>, vector<128x256xf32>
    %cst_45 = arith.constant dense<0.000000e+00> : vector<8x256xf32>
    %116 = tpu.matmul %107, %115, %cst_45 {dimension_numbers = #tpu.dot_dimension_numbers<[1], [0], [0], [1], [0, 0, 1, 1], [], []>} : vector<8x128xf32>, vector<128x256xf32>, vector<8x256xf32> -> vector<8x256xf32>
    %117 = vector.extract_strided_slice %114 {offsets = [0, 0], sizes = [8, 128], strides = [1, 1]} : vector<8x384xf32> to vector<8x128xf32>
    %118 = vector.extract_strided_slice %116 {offsets = [0, 0], sizes = [8, 128], strides = [1, 1]} : vector<8x256xf32> to vector<8x128xf32>
    %119 = arith.addf %117, %118 : vector<8x128xf32>
    %120 = arith.negf %119 : vector<8x128xf32>
    %121 = math.exp %120 : vector<8x128xf32>
    %cst_46 = arith.constant 1.000000e+00 : f32
    %122 = vector.broadcast %cst_46 : f32 to vector<8x128xf32>
    %123 = arith.addf %122, %121 : vector<8x128xf32>
    %124 = arith.divf %122, %123 : vector<8x128xf32>
    %125 = vector.extract_strided_slice %114 {offsets = [0, 128], sizes = [8, 128], strides = [1, 1]} : vector<8x384xf32> to vector<8x128xf32>
    %126 = vector.extract_strided_slice %116 {offsets = [0, 128], sizes = [8, 128], strides = [1, 1]} : vector<8x256xf32> to vector<8x128xf32>
    %127 = arith.addf %125, %126 : vector<8x128xf32>
    %128 = arith.negf %127 : vector<8x128xf32>
    %129 = math.exp %128 : vector<8x128xf32>
    %cst_47 = arith.constant 1.000000e+00 : f32
    %130 = vector.broadcast %cst_47 : f32 to vector<8x128xf32>
    %131 = arith.addf %130, %129 : vector<8x128xf32>
    %132 = arith.divf %130, %131 : vector<8x128xf32>
    %133 = vector.extract_strided_slice %114 {offsets = [0, 256], sizes = [8, 128], strides = [1, 1]} : vector<8x384xf32> to vector<8x128xf32>
    %134 = arith.mulf %132, %107 : vector<8x128xf32>
    %c0_48 = arith.constant 0 : index
    %c0_49 = arith.constant 0 : index
    %135 = vector.load %arg3[%c0_48, %c0_49] : memref<128x128xf32, #tpu.memory_space<vmem>>, vector<128x128xf32>
    %cst_50 = arith.constant dense<0.000000e+00> : vector<8x128xf32>
    %136 = tpu.matmul %134, %135, %cst_50 {dimension_numbers = #tpu.dot_dimension_numbers<[1], [0], [0], [1], [0, 0, 1, 1], [], []>} : vector<8x128xf32>, vector<128x128xf32>, vector<8x128xf32> -> vector<8x128xf32>
    %137 = arith.addf %133, %136 : vector<8x128xf32>
    %138 = math.tanh %137 : vector<8x128xf32>
    %139 = arith.mulf %124, %107 : vector<8x128xf32>
    %cst_51 = arith.constant 1.000000e+00 : f32
    %140 = vector.broadcast %cst_51 : f32 to vector<8x128xf32>
    %141 = arith.subf %140, %124 : vector<8x128xf32>
    %142 = arith.mulf %141, %138 : vector<8x128xf32>
    %143 = arith.addf %139, %142 : vector<8x128xf32>
    %144 = arith.index_cast %c3_i32 : i32 to index
    %c0_52 = arith.constant 0 : index
    %c0_53 = arith.constant 0 : index
    %145 = vector.load %arg5[%144, %c0_52, %c0_53] : memref<4x8x128xf32, #tpu.memory_space<vmem>>, vector<1x8x128xf32>
    %146 = vector.shape_cast %145 : vector<1x8x128xf32> to vector<8x128xf32>
    %147 = vector.shape_cast %143 : vector<8x128xf32> to vector<1x8x128xf32>
    tpu.vector_store %arg5[%144, %c0_52, %c0_53], %147 {strides = array<i32>} : memref<4x8x128xf32, #tpu.memory_space<vmem>>, vector<1x8x128xf32>,
    %c4_i32 = arith.constant 4 : i32
    %c0_54 = arith.constant 0 : index
    %c0_55 = arith.constant 0 : index
    %148 = vector.load %arg6[%c0_54, %c0_55] : memref<8x128xf32, #tpu.memory_space<vmem>>, vector<8x128xf32>
    tpu.vector_store %arg6[%c0_54, %c0_55], %143 {strides = array<i32>} : memref<8x128xf32, #tpu.memory_space<vmem>>, vector<8x128xf32>,
    return
  }
  func.func @transform_0(%arg0: i32) -> (i32, i32, i32) {
    %c0_i32 = arith.constant 0 : i32
    %c0_i32_0 = arith.constant 0 : i32
    %c0_i32_1 = arith.constant 0 : i32
    return %arg0, %c0_i32, %c0_i32_0 : i32, i32, i32
  }
  func.func @transform_1(%arg0: i32) -> (i32, i32) {
    %c0_i32 = arith.constant 0 : i32
    %c0_i32_0 = arith.constant 0 : i32
    %c0_i32_1 = arith.constant 0 : i32
    return %c0_i32, %c0_i32_0 : i32, i32
  }
  func.func @transform_2(%arg0: i32) -> (i32, i32) {
    %c0_i32 = arith.constant 0 : i32
    %c0_i32_0 = arith.constant 0 : i32
    %c0_i32_1 = arith.constant 0 : i32
    return %c0_i32, %c0_i32_0 : i32, i32
  }
  func.func @transform_4(%arg0: i32) -> (i32, i32, i32) {
    %c0_i32 = arith.constant 0 : i32
    %c0_i32_0 = arith.constant 0 : i32
    %c0_i32_1 = arith.constant 0 : i32
    return %arg0, %c0_i32, %c0_i32_0 : i32, i32, i32
  }
}

</mosaic_0001>

<bundles_post_ra>
// kernel: grum_forward.1
= control target key start
LH: loop header
LB: loop body
LE: loop exit
PB: predicated region body
PF: predicated region fallthrough
CT: control target
= control target key end

     0   :  { %s1491_s15 = smov 0   ;;  %s2056_s0 = inlined_call_operand.vmem [shape: f32[12,8,384], index: 0, kind: input, shape index: {}]   ;;  %s2057_s1 = inlined_call_operand.vmem [shape: f32[128,256], index: 1, kind: input, shape index: {}]   ;;  %s2058_s2 = inlined_call_operand.vmem [shape: f32[128,128], index: 2, kind: input, shape index: {}]   ;;  %s2059_s3 = inlined_call_operand.vmem [shape: f32[8,128], index: 3, kind: input, shape index: {}]   ;;  %s2060_s4 = inlined_call_operand.vmem [shape: f32[12,8,128], index: 4, kind: output, shape index: {}]  }
   0x1 LB: > { %s1162_s16 = sadd.s32 4294967295, %s1462_s15   ;;  %p1166_p0 = scmp.ge.s32.totalorder %s1462_s15, 1  ;;  %s1462_s15 = sphi %s1491_s15, %s14_s15  }
   0x2   : > { %p140_p1 = scmp.lt.s32.totalorder %s1462_s15, 4 }
   0x4   : > { %p141_p2 = pnand %p1166_p0, %p140_p1 }
   0x6   : > { %144 = sbr.rel (%p141_p2) target bundleno = 1833 (0x729), region = 32 }
   0xb   : > { %s1167_s17 = sshll.u32 %s1162_s16, 2  ;;  %p1171_p4 = scmp.ne.s32.totalorder %s1162_s16, 0 }
   0xc   : > { %p166_p3 = scmp.lt.s32.totalorder %s1167_s17, 11 }
   0xd   : > { %181 = sbr.rel (%p1171_p4) target bundleno = 23 (0x17), region = 36 }
   0xe   : > { %s2070_s17 = smov (!%p166_p3, %s1167_s17), 11 }
   0xf   : > { %s1403_s18 = smul.u32 24, %s2070_s17  ;;  %s1170_s19 = sshll.u32 %s2070_s17, 3 }
  0x10   : > { %s1502_s22 = scalar_lea.vmem %s2060_s4, %s1170_s19 }
  0x11   : > { %s1507_s25 = scalar_lea.vmem %s2056_s0, %s1403_s18 }
  0x12   : > { %v215_v0 = vld [vmem:[%s2059_s3] sm:$0xff] }
  0x13   : > { %216 = vst [vmem:[#allocation2] sm:$0xff] %v215_v0 }
  0x14   : > { %224 = vsyncadd [#allocation3], 128 }
  0x15   : > { %1458 = dma.done.wait [#allocation3], 128 }
  0x16   : > { %1459 = vsyncadd [#allocation3], 4294967168 }
  0x17 PF: > { %v1515_v1 = vld [vmem:[%s2057_s1 + $0xf8] sm:$0xff]  ;;  %v1520_v2 = vld [vmem:[%s2057_s1 + $0xf0] sm:$0xff]  ;;  %v1525_v3 = vld [vmem:[%s2057_s1 + $0xe8] sm:$0xff]  ;;  %v2063_v5 = vmov 0.0   ;;  %vm1465_vm0 = vmmov 0  }
  0x18   : > { %264 = vmatprep.subr.mxu0 %v1515_v1  ;;  %v1531_v4 = vld [vmem:[%s2057_s1 + $0xe0] sm:$0xff]  ;;  %328 = vmatprep.mubr.f32.mxu0 %v2063_v5  ;;  %v1538_v6 = vld [vmem:[%s2057_s1 + $0xd8] sm:$0xff]  ;;  %v1545_v7 = vld [vmem:[%s2057_s1 + $0xd0] sm:$0xff] }
  0x19   : > { %265 = vmatpush1.msra.mxu0 %v1520_v2  ;;  %1263 = vmatprep.subr.mxu1 %v2063_v5  ;;  %v1551_v8 = vld [vmem:[%s2057_s1 + $0xc8] sm:$0xff]  ;;  %v1557_v9 = vld [vmem:[%s2057_s1 + $0xc0] sm:$0xff]  ;;  %v1563_v10 = vld [vmem:[%s2057_s1 + $0xb8] sm:$0xff] }
  0x1a   : > { %266 = vmatprep.subr.mxu0 %v1525_v3  ;;  %v1569_v11 = vld [vmem:[%s2057_s1 + $0xb0] sm:$0xff]  ;;  %v1575_v12 = vld [vmem:[%s2057_s1 + $0xa8] sm:$0xff]  ;;  %v1581_v13 = vld [vmem:[%s2057_s1 + $0xa0] sm:$0xff]  ;;  %1295 = vmatprep.mubr.msk.f32.mxu1 %vm1465_vm0, %v2063_v5 }
  0x1b   : > { %267 = vmatpush1.msra.mxu0 %v1531_v4  ;;  %v1587_v14 = vld [vmem:[%s2057_s1 + $0x98] sm:$0xff]  ;;  %v1593_v15 = vld [vmem:[%s2057_s1 + $0x90] sm:$0xff]  ;;  %v1599_v16 = vld [vmem:[%s2057_s1 + $0x88] sm:$0xff] }
  0x1c   : > { %268 = vmatprep.subr.mxu0 %v1538_v6  ;;  %v1605_v17 = vld [vmem:[%s2057_s1 + $0x80] sm:$0xff]  ;;  %v1611_v18 = vld [vmem:[%s2057_s1 + $0x78] sm:$0xff]  ;;  %v1617_v19 = vld [vmem:[%s2057_s1 + $0x70] sm:$0xff] }
  0x1d   : > { %269 = vmatpush1.msra.mxu0 %v1545_v7  ;;  %v1623_v20 = vld [vmem:[%s2057_s1 + $0x68] sm:$0xff]  ;;  %v1629_v21 = vld [vmem:[%s2057_s1 + $0x60] sm:$0xff]  ;;  %v1635_v22 = vld [vmem:[%s2057_s1 + $0x58] sm:$0xff] }
  0x1e   : > { %270 = vmatprep.subr.mxu0 %v1551_v8  ;;  %v1641_v23 = vld [vmem:[%s2057_s1 + $0x50] sm:$0xff]  ;;  %v1647_v24 = vld [vmem:[%s2057_s1 + $0x48] sm:$0xff]  ;;  %v1653_v25 = vld [vmem:[%s2057_s1 + $0x40] sm:$0xff] }
  0x1f   : > { %271 = vmatpush1.msra.mxu0 %v1557_v9  ;;  %v1659_v26 = vld [vmem:[%s2057_s1 + $0x38] sm:$0xff]  ;;  %v1665_v27 = vld [vmem:[%s2057_s1 + $0x30] sm:$0xff]  ;;  %v1671_v28 = vld [vmem:[%s2057_s1 + $0x28] sm:$0xff] }
  0x20   : > { %272 = vmatprep.subr.mxu0 %v1563_v10  ;;  %v1677_v29 = vld [vmem:[%s2057_s1 + $0x20] sm:$0xff]  ;;  %v1683_v30 = vld [vmem:[%s2057_s1 + $0x18] sm:$0xff]  ;;  %v1689_v31 = vld [vmem:[%s2057_s1 + $0x10] sm:$0xff] }
  0x21   : > { %273 = vmatpush1.msra.mxu0 %v1569_v11  ;;  %v1695_v32 = vld [vmem:[%s2057_s1 + $0x8] sm:$0xff]  ;;  %v1701_v33 = vld [vmem:[%s2057_s1] sm:$0xff]  ;;  %v1746_v35 = vld [vmem:[%s2058_s2 + $0x78] sm:$0xff] }
  0x22   : > { %274 = vmatprep.subr.mxu0 %v1575_v12  ;;  %v1704_v34 = vld [vmem:[#allocation2] sm:$0xff]  ;;  %1264 = vmatpush3.msra.mxu1 %v1746_v35  ;;  %v1753_v36 = vld [vmem:[%s2058_s2 + $0x70] sm:$0xff]  ;;  %v1760_v37 = vld [vmem:[%s2058_s2 + $0x68] sm:$0xff] }
  0x23   : > { %275 = vmatpush1.msra.mxu0 %v1581_v13  ;;  %1265 = vmatprep.subr.mxu1 %v2063_v5  ;;  %v1767_v38 = vld [vmem:[%s2058_s2 + $0x60] sm:$0xff]  ;;  %v1774_v39 = vld [vmem:[%s2058_s2 + $0x58] sm:$0xff]  ;;  %v1781_v40 = vld [vmem:[%s2058_s2 + $0x50] sm:$0xff] }
  0x24   : > { %276 = vmatprep.subr.mxu0 %v1587_v14  ;;  %1266 = vmatpush3.msra.mxu1 %v1753_v36  ;;  %v1788_v41 = vld [vmem:[%s2058_s2 + $0x48] sm:$0xff]  ;;  %v1795_v42 = vld [vmem:[%s2058_s2 + $0x40] sm:$0xff]  ;;  %v1802_v43 = vld [vmem:[%s2058_s2 + $0x38] sm:$0xff] }
  0x25   : > { %277 = vmatpush1.msra.mxu0 %v1593_v15  ;;  %1267 = vmatprep.subr.mxu1 %v2063_v5  ;;  %v1807_v44 = vld [vmem:[%s2058_s2 + $0x30] sm:$0xff]  ;;  %v1816_v45 = vld [vmem:[%s2058_s2 + $0x28] sm:$0xff]  ;;  %v1823_v46 = vld [vmem:[%s2058_s2 + $0x20] sm:$0xff] }
  0x26   : > { %278 = vmatprep.subr.mxu0 %v1599_v16  ;;  %1268 = vmatpush3.msra.mxu1 %v1760_v37  ;;  %v1830_v47 = vld [vmem:[%s2058_s2 + $0x18] sm:$0xff]  ;;  %v1837_v48 = vld [vmem:[%s2058_s2 + $0x10] sm:$0xff]  ;;  %v1844_v49 = vld [vmem:[%s2058_s2 + $0x8] sm:$0xff] }
  0x27   : > { %279 = vmatpush1.msra.mxu0 %v1605_v17  ;;  %1269 = vmatprep.subr.mxu1 %v2063_v5  ;;  %v1851_v50 = vld [vmem:[%s2058_s2] sm:$0xff]  ;;  %v230_v52 = vld [vmem:[%s1507_s25 + $0x8] sm:$0xff] }
  0x28   : > { %280 = vmatprep.subr.mxu0 %v1611_v18  ;;  %1270 = vmatpush3.msra.mxu1 %v1767_v38  ;;  %2065 = vst [vmem:[#allocation6_spill] sm:$0xff] %v1851_v50  ;;  %v229_v60 = vld [vmem:[%s1507_s25] sm:$0xff] }
  0x29   : > { %281 = vmatpush1.msra.mxu0 %v1617_v19  ;;  %1271 = vmatprep.subr.mxu1 %v2063_v5 }
  0x2a   : > { %282 = vmatprep.subr.mxu0 %v1623_v20  ;;  %1272 = vmatpush3.msra.mxu1 %v1774_v39 }
  0x2b   : > { %283 = vmatpush1.msra.mxu0 %v1629_v21  ;;  %1273 = vmatprep.subr.mxu1 %v2063_v5 }
  0x2c   : > { %284 = vmatprep.subr.mxu0 %v1635_v22  ;;  %1274 = vmatpush3.msra.mxu1 %v1781_v40 }
  0x2d   : > { %285 = vmatpush1.msra.mxu0 %v1641_v23  ;;  %1275 = vmatprep.subr.mxu1 %v2063_v5 }
  0x2e   : > { %286 = vmatprep.subr.mxu0 %v1647_v24  ;;  %1276 = vmatpush3.msra.mxu1 %v1788_v41 }
  0x2f   : > { %287 = vmatpush1.msra.mxu0 %v1653_v25  ;;  %1277 = vmatprep.subr.mxu1 %v2063_v5 }
  0x30   : > { %288 = vmatprep.subr.mxu0 %v1659_v26  ;;  %1278 = vmatpush3.msra.mxu1 %v1795_v42 }
  0x31   : > { %289 = vmatpush1.msra.mxu0 %v1665_v27  ;;  %1279 = vmatprep.subr.mxu1 %v2063_v5 }
  0x32   : > { %290 = vmatprep.subr.mxu0 %v1671_v28  ;;  %1280 = vmatpush3.msra.mxu1 %v1802_v43 }
  0x33   : > { %291 = vmatpush1.msra.mxu0 %v1677_v29  ;;  %1281 = vmatprep.subr.mxu1 %v2063_v5 }
  0x34   : > { %292 = vmatprep.subr.mxu0 %v1683_v30  ;;  %1282 = vmatpush3.msra.mxu1 %v1807_v44 }
  0x35   : > { %293 = vmatpush1.msra.mxu0 %v1689_v31  ;;  %1283 = vmatprep.subr.mxu1 %v2063_v5 }
  0x36   : > { %294 = vmatprep.subr.mxu0 %v1695_v32  ;;  %1284 = vmatpush3.msra.mxu1 %v1816_v45 }
  0x37   : > { %295 = vmatpush1.msra.mxu0 %v1701_v33  ;;  %1285 = vmatprep.subr.mxu1 %v2063_v5 }
  0x38   : > { %329 = vmatmul.mubr.f32.vlgmr.msra.gmra.mxu0 %v1704_v34  ;;  %479 = vmatprep.subr.mxu0 %v1515_v1 }
  0x39   : > { %480 = vmatpush1.msra.mxu0 %v1520_v2  ;;  %543 = vmatprep.mubr.f32.mxu0 %v2063_v5 }
  0x3a   : > { %481 = vmatprep.subr.mxu0 %v1525_v3  ;;  %1286 = vmatpush3.msra.mxu1 %v1823_v46 }
  0x3b   : > { %482 = vmatpush1.msra.mxu0 %v1531_v4  ;;  %1287 = vmatprep.subr.mxu1 %v2063_v5 }
  0x3c   : > { %483 = vmatprep.subr.mxu0 %v1538_v6  ;;  %1288 = vmatpush3.msra.mxu1 %v1830_v47 }
  0x3d   : > { %484 = vmatpush1.msra.mxu0 %v1545_v7  ;;  %1289 = vmatprep.subr.mxu1 %v2063_v5 }
  0x3e   : > { %485 = vmatprep.subr.mxu0 %v1551_v8  ;;  %1290 = vmatpush3.msra.mxu1 %v1837_v48 }
  0x3f   : > { %486 = vmatpush1.msra.mxu0 %v1557_v9  ;;  %1291 = vmatprep.subr.mxu1 %v2063_v5 }
  0x40   : > { %487 = vmatprep.subr.mxu0 %v1563_v10  ;;  %1292 = vmatpush3.msra.mxu1 %v1844_v49 }
  0x41   : > { %488 = vmatpush1.msra.mxu0 %v1569_v11  ;;  %1293 = vmatprep.subr.mxu1 %v2063_v5 }
  0x42   : > { %489 = vmatprep.subr.mxu0 %v1575_v12  ;;  %1294 = vmatpush3.msra.mxu1 %v1851_v50 }
  0x43   : > { %490 = vmatpush1.msra.mxu0 %v1581_v13  ;;  %1298 = vmatprep.subr.mxu1 %v2063_v5 }
  0x44   : > { %491 = vmatprep.subr.mxu0 %v1587_v14 }
  0x45   : > { %492 = vmatpush1.msra.mxu0 %v1593_v15 }
  0x46   : > { %493 = vmatprep.subr.mxu0 %v1599_v16 }
  0x47   : > { %494 = vmatpush1.msra.mxu0 %v1605_v17 }
  0x48   : > { %495 = vmatprep.subr.mxu0 %v1611_v18 }
  0x49   : > { %496 = vmatpush1.msra.mxu0 %v1617_v19 }
  0x4a   : > { %497 = vmatprep.subr.mxu0 %v1623_v20 }
  0x4b   : > { %498 = vmatpush1.msra.mxu0 %v1629_v21 }
  0x4c   : > { %499 = vmatprep.subr.mxu0 %v1635_v22 }
  0x4d   : > { %500 = vmatpush1.msra.mxu0 %v1641_v23 }
  0x4e   : > { %501 = vmatprep.subr.mxu0 %v1647_v24 }
  0x4f   : > { %502 = vmatpush1.msra.mxu0 %v1653_v25 }
  0x50   : > { %503 = vmatprep.subr.mxu0 %v1659_v26 }
  0x51   : > { %504 = vmatpush1.msra.mxu0 %v1665_v27 }
  0x52   : > { %505 = vmatprep.subr.mxu0 %v1671_v28 }
  0x53   : > { %506 = vmatpush1.msra.mxu0 %v1677_v29 }
  0x54   : > { %507 = vmatprep.subr.mxu0 %v1683_v30 }
  0x55   : > { %508 = vmatpush1.msra.mxu0 %v1689_v31 }
  0x56   : > { %509 = vmatprep.subr.mxu0 %v1695_v32 }
  0x57   : > { %510 = vmatpush1.msra.mxu0 %v1701_v33 }
  0x58   : > { %695 = vmatprep.subr.mxu0 %v1515_v1 }
  0xf8   : > { %v330_v51 = vpop.f32.mrf.mxu0 }
  0xf9   : > { %v335_v61 = vadd.f32 %v330_v51, %v229_v60  ;;  %v2066_v51 = vmov 0.0  }
  0xfa   : > { %v332_v53 = vpop.f32.mrf.mxu0 }
  0xfb   : > { %v342_v54 = vadd.f32 %v332_v53, %v230_v52  ;;  %v1172_v62 = vmul.f32 -1.442695, %v335_v61  ;;  %v231_v52 = vld [vmem:[%s1507_s25 + $0x10] sm:$0xff] }
  0xfd   : > { %v1173_v55 = vmul.f32 -1.442695, %v342_v54 }
  0xff   : > { %1414 = vpow2.f32 %v1173_v55 }
 0x10c   : > { %v1415_v56 = vpop.eup %1414 }
 0x10d   : > { %v346_v57 = vadd.f32 1.0, %v1415_v56 }
 0x10f   : > { %1416 = vrcp.f32 %v346_v57 }
 0x110   : > { %1418 = vpow2.f32 %v1172_v62 }
 0x11c   : > { %v1417_v58 = vpop.eup %1416 }
 0x11d   : > { %v349_v59 = vmul.f32 %v1417_v58, %v1704_v34  ;;  %v1419_v63 = vpop.eup %1418 }
 0x11e   : > { %v339_v0 = vadd.f32 1.0, %v1419_v63 }
 0x11f   : > { %1296 = vmatmul.mubr.f32.vlgmr.msra.gmra.mxu1 %v349_v59 }
 0x120   : > { %1299 = vmatpush3.msra.mxu1 %v1746_v35  ;;  %1330 = vmatprep.mubr.msk.f32.mxu1 %vm1465_vm0, %v2063_v5  ;;  %1420 = vrcp.f32 %v339_v0 }
 0x121   : > { %1300 = vmatprep.subr.mxu1 %v2063_v5 }
 0x122   : > { %1301 = vmatpush3.msra.mxu1 %v1753_v36 }
 0x123   : > { %1302 = vmatprep.subr.mxu1 %v2063_v5 }
 0x124   : > { %1303 = vmatpush3.msra.mxu1 %v1760_v37 }
 0x125   : > { %1304 = vmatprep.subr.mxu1 %v2063_v5 }
 0x126   : > { %1305 = vmatpush3.msra.mxu1 %v1767_v38 }
 0x127   : > { %1306 = vmatprep.subr.mxu1 %v2063_v5 }
 0x128   : > { %1307 = vmatpush3.msra.mxu1 %v1774_v39 }
 0x129   : > { %1308 = vmatprep.subr.mxu1 %v2063_v5 }
 0x12a   : > { %1309 = vmatpush3.msra.mxu1 %v1781_v40 }
 0x12b   : > { %1310 = vmatprep.subr.mxu1 %v2063_v5 }
 0x12c   : > { %1311 = vmatpush3.msra.mxu1 %v1788_v41 }
 0x12d   : > { %1312 = vmatprep.subr.mxu1 %v2063_v5  ;;  %v1421_v56 = vpop.eup %1420 }
 0x12e   : > { %1313 = vmatpush3.msra.mxu1 %v1795_v42  ;;  %v439_v57 = vsub.f32 1.0, %v1421_v56  ;;  %v438_v59 = vmul.f32 %v1421_v56, %v1704_v34 }
 0x12f   : > { %1314 = vmatprep.subr.mxu1 %v2063_v5 }
 0x130   : > { %1315 = vmatpush3.msra.mxu1 %v1802_v43 }
 0x131   : > { %1316 = vmatprep.subr.mxu1 %v2063_v5 }
 0x132   : > { %1317 = vmatpush3.msra.mxu1 %v1807_v44 }
 0x133   : > { %1318 = vmatprep.subr.mxu1 %v2063_v5 }
 0x134   : > { %1319 = vmatpush3.msra.mxu1 %v1816_v45 }
 0x135   : > { %1320 = vmatprep.subr.mxu1 %v2063_v5 }
 0x136   : > { %1321 = vmatpush3.msra.mxu1 %v1823_v46 }
 0x137   : > { %1322 = vmatprep.subr.mxu1 %v2063_v5 }
 0x138   : > { %1323 = vmatpush3.msra.mxu1 %v1830_v47 }
 0x139   : > { %1324 = vmatprep.subr.mxu1 %v2063_v5 }
 0x13a   : > { %1325 = vmatpush3.msra.mxu1 %v1837_v48 }
 0x13b   : > { %1326 = vmatprep.subr.mxu1 %v2063_v5 }
 0x13c   : > { %1327 = vmatpush3.msra.mxu1 %v1844_v49 }
 0x13d   : > { %1328 = vmatprep.subr.mxu1 %v2063_v5 }
 0x13e   : > { %1329 = vmatpush3.msra.mxu1 %v1851_v50 }
 0x13f   : > { %1333 = vmatprep.subr.mxu1 %v2063_v5 }
 0x1df   : > { %v432_v53 = vpop.f32.mrf.mxu1 }
 0x1e0   : > { %v436_v54 = vadd.f32 %v432_v53, %v231_v52 }
 0x1e1   : > { %v1297_v55 = vpop.f32.mrf.mxu1 }
 0x1e2   : > { %1422 = vtanh.f32 %v436_v54  ;;  %v1174_v54 = vld [vmem:[%s1507_s25 + $0x18] sm:$0xff] }
 0x1ef   : > { %v1423_v58 = vpop.eup %1422 }
 0x1f0   : > { %v440_v50 = vmul.f32 %v1423_v58, %v439_v57 }
 0x1f2   : > { %v1896_v5 = vadd.f32 %v440_v50, %v438_v59  ;;  %v1175_v50 = vld [vmem:[%s1507_s25 + $0x20] sm:$0xff]  ;;  %v1176_v59 = vld [vmem:[%s1507_s25 + $0x28] sm:$0xff] }
 0x1f4   : > { %442 = vst [vmem:[%s1502_s22] sm:$0xff] %v1896_v5  ;;  %544 = vmatmul.mubr.f32.vlgmr.msra.gmra.mxu0 %v1896_v5 }
 0x1f5   : > { %696 = vmatpush1.msra.mxu0 %v1520_v2  ;;  %759 = vmatprep.mubr.f32.mxu0 %v2066_v51 }
 0x1f6   : > { %697 = vmatprep.subr.mxu0 %v1525_v3 }
 0x1f7   : > { %698 = vmatpush1.msra.mxu0 %v1531_v4 }
 0x1f8   : > { %699 = vmatprep.subr.mxu0 %v1538_v6 }
 0x1f9   : > { %700 = vmatpush1.msra.mxu0 %v1545_v7 }
 0x1fa   : > { %701 = vmatprep.subr.mxu0 %v1551_v8 }
 0x1fb   : > { %702 = vmatpush1.msra.mxu0 %v1557_v9 }
 0x1fc   : > { %703 = vmatprep.subr.mxu0 %v1563_v10 }
 0x1fd   : > { %704 = vmatpush1.msra.mxu0 %v1569_v11 }
 0x1fe   : > { %705 = vmatprep.subr.mxu0 %v1575_v12 }
 0x1ff   : > { %706 = vmatpush1.msra.mxu0 %v1581_v13 }
 0x200   : > { %707 = vmatprep.subr.mxu0 %v1587_v14 }
 0x201   : > { %708 = vmatpush1.msra.mxu0 %v1593_v15 }
 0x202   : > { %709 = vmatprep.subr.mxu0 %v1599_v16 }
 0x203   : > { %710 = vmatpush1.msra.mxu0 %v1605_v17 }
 0x204   : > { %711 = vmatprep.subr.mxu0 %v1611_v18 }
 0x205   : > { %712 = vmatpush1.msra.mxu0 %v1617_v19 }
 0x206   : > { %713 = vmatprep.subr.mxu0 %v1623_v20 }
 0x207   : > { %714 = vmatpush1.msra.mxu0 %v1629_v21 }
 0x208   : > { %715 = vmatprep.subr.mxu0 %v1635_v22 }
 0x209   : > { %716 = vmatpush1.msra.mxu0 %v1641_v23 }
 0x20a   : > { %717 = vmatprep.subr.mxu0 %v1647_v24 }
 0x20b   : > { %718 = vmatpush1.msra.mxu0 %v1653_v25 }
 0x20c   : > { %719 = vmatprep.subr.mxu0 %v1659_v26 }
 0x20d   : > { %720 = vmatpush1.msra.mxu0 %v1665_v27 }
 0x20e   : > { %721 = vmatprep.subr.mxu0 %v1671_v28 }
 0x20f   : > { %722 = vmatpush1.msra.mxu0 %v1677_v29 }
 0x210   : > { %723 = vmatprep.subr.mxu0 %v1683_v30 }
 0x211   : > { %724 = vmatpush1.msra.mxu0 %v1689_v31 }
 0x212   : > { %725 = vmatprep.subr.mxu0 %v1695_v32 }
 0x213   : > { %726 = vmatpush1.msra.mxu0 %v1701_v33 }
 0x214   : > { %911 = vmatprep.subr.mxu0 %v1515_v1  ;;  %v2067_v1 = vld [vmem:[#allocation6_spill] sm:$0xff] }
 0x2b4   : > { %v545_v34 = vpop.f32.mrf.mxu0 }
 0x2b5   : > { %v550_v55 = vadd.f32 %v1174_v54, %v545_v34 }
 0x2b6   : > { %v547_v60 = vpop.f32.mrf.mxu0 }
 0x2b7   : > { %v557_v61 = vadd.f32 %v1175_v50, %v547_v60  ;;  %v1177_v56 = vmul.f32 -1.442695, %v550_v55 }
 0x2b9   : > { %v1178_v62 = vmul.f32 -1.442695, %v557_v61 }
 0x2bb   : > { %1424 = vpow2.f32 %v1178_v62 }
 0x2c8   : > { %v1425_v63 = vpop.eup %1424 }
 0x2c9   : > { %v561_v0 = vadd.f32 1.0, %v1425_v63 }
 0x2cb   : > { %1426 = vrcp.f32 %v561_v0 }
 0x2cc   : > { %1428 = vpow2.f32 %v1177_v56 }
 0x2d8   : > { %v1427_v52 = vpop.eup %1426 }
 0x2d9   : > { %v564_v53 = vmul.f32 %v1427_v52, %v1896_v5  ;;  %v1429_v57 = vpop.eup %1428 }
 0x2da   : > { %v554_v58 = vadd.f32 1.0, %v1429_v57 }
 0x2db   : > { %1331 = vmatmul.mubr.f32.vlgmr.msra.gmra.mxu1 %v564_v53 }
 0x2dc   : > { %1334 = vmatpush3.msra.mxu1 %v1746_v35  ;;  %1365 = vmatprep.mubr.msk.f32.mxu1 %vm1465_vm0, %v2066_v51  ;;  %1430 = vrcp.f32 %v554_v58 }
 0x2dd   : > { %1335 = vmatprep.subr.mxu1 %v2066_v51 }
 0x2de   : > { %1336 = vmatpush3.msra.mxu1 %v1753_v36 }
 0x2df   : > { %1337 = vmatprep.subr.mxu1 %v2066_v51 }
 0x2e0   : > { %1338 = vmatpush3.msra.mxu1 %v1760_v37 }
 0x2e1   : > { %1339 = vmatprep.subr.mxu1 %v2066_v51 }
 0x2e2   : > { %1340 = vmatpush3.msra.mxu1 %v1767_v38 }
 0x2e3   : > { %1341 = vmatprep.subr.mxu1 %v2066_v51 }
 0x2e4   : > { %1342 = vmatpush3.msra.mxu1 %v1774_v39 }
 0x2e5   : > { %1343 = vmatprep.subr.mxu1 %v2066_v51 }
 0x2e6   : > { %1344 = vmatpush3.msra.mxu1 %v1781_v40 }
 0x2e7   : > { %1345 = vmatprep.subr.mxu1 %v2066_v51 }
 0x2e8   : > { %1346 = vmatpush3.msra.mxu1 %v1788_v41 }
 0x2e9   : > { %1347 = vmatprep.subr.mxu1 %v2066_v51  ;;  %v1431_v62 = vpop.eup %1430 }
 0x2ea   : > { %1348 = vmatpush3.msra.mxu1 %v1795_v42  ;;  %v654_v63 = vsub.f32 1.0, %v1431_v62  ;;  %v653_v52 = vmul.f32 %v1431_v62, %v1896_v5 }
 0x2eb   : > { %1349 = vmatprep.subr.mxu1 %v2066_v51 }
 0x2ec   : > { %1350 = vmatpush3.msra.mxu1 %v1802_v43 }
 0x2ed   : > { %1351 = vmatprep.subr.mxu1 %v2066_v51 }
 0x2ee   : > { %1352 = vmatpush3.msra.mxu1 %v1807_v44 }
 0x2ef   : > { %1353 = vmatprep.subr.mxu1 %v2066_v51 }
 0x2f0   : > { %1354 = vmatpush3.msra.mxu1 %v1816_v45 }
 0x2f1   : > { %1355 = vmatprep.subr.mxu1 %v2066_v51 }
 0x2f2   : > { %1356 = vmatpush3.msra.mxu1 %v1823_v46 }
 0x2f3   : > { %1357 = vmatprep.subr.mxu1 %v2066_v51 }
 0x2f4   : > { %1358 = vmatpush3.msra.mxu1 %v1830_v47 }
 0x2f5   : > { %1359 = vmatprep.subr.mxu1 %v2066_v51 }
 0x2f6   : > { %1360 = vmatpush3.msra.mxu1 %v1837_v48 }
 0x2f7   : > { %1361 = vmatprep.subr.mxu1 %v2066_v51 }
 0x2f8   : > { %1362 = vmatpush3.msra.mxu1 %v1844_v49 }
 0x2f9   : > { %1363 = vmatprep.subr.mxu1 %v2066_v51 }
 0x2fa   : > { %1364 = vmatpush3.msra.mxu1 %v2067_v1 }
 0x2fb   : > { %1368 = vmatprep.subr.mxu1 %v2066_v51 }
 0x39b   : > { %v647_v50 = vpop.f32.mrf.mxu1 }
 0x39c   : > { %v651_v60 = vadd.f32 %v1176_v59, %v647_v50 }
 0x39d   : > { %v1332_v61 = vpop.f32.mrf.mxu1 }
 0x39e   : > { %1432 = vtanh.f32 %v651_v60 }
 0x3ab   : > { %v1433_v0 = vpop.eup %1432 }
 0x3ac   : > { %v655_v53 = vmul.f32 %v1433_v0, %v654_v63 }
 0x3ae   : > { %v1973_v1 = vadd.f32 %v655_v53, %v653_v52 }
 0x3b0   : > { %1179 = vst [vmem:[%s1502_s22 + $0x8] sm:$0xff] %v1973_v1  ;;  %760 = vmatmul.mubr.f32.vlgmr.msra.gmra.mxu0 %v1973_v1 }
 0x3b1   : > { %912 = vmatpush1.msra.mxu0 %v1520_v2  ;;  %975 = vmatprep.mubr.f32.mxu0 %v2066_v51 }
 0x3b2   : > { %913 = vmatprep.subr.mxu0 %v1525_v3  ;;  %v1181_v3 = vld [vmem:[%s1507_s25 + $0x38] sm:$0xff] }
 0x3b3   : > { %914 = vmatpush1.msra.mxu0 %v1531_v4 }
 0x3b4   : > { %915 = vmatprep.subr.mxu0 %v1538_v6 }
 0x3b5   : > { %916 = vmatpush1.msra.mxu0 %v1545_v7 }
 0x3b6   : > { %917 = vmatprep.subr.mxu0 %v1551_v8 }
 0x3b7   : > { %918 = vmatpush1.msra.mxu0 %v1557_v9 }
 0x3b8   : > { %919 = vmatprep.subr.mxu0 %v1563_v10 }
 0x3b9   : > { %920 = vmatpush1.msra.mxu0 %v1569_v11  ;;  %v2068_v11 = vld [vmem:[#allocation6_spill] sm:$0xff] }
 0x3ba   : > { %921 = vmatprep.subr.mxu0 %v1575_v12  ;;  %v1180_v12 = vld [vmem:[%s1507_s25 + $0x30] sm:$0xff] }
 0x3bb   : > { %922 = vmatpush1.msra.mxu0 %v1581_v13 }
 0x3bc   : > { %923 = vmatprep.subr.mxu0 %v1587_v14 }
 0x3bd   : > { %924 = vmatpush1.msra.mxu0 %v1593_v15 }
 0x3be   : > { %925 = vmatprep.subr.mxu0 %v1599_v16 }
 0x3bf   : > { %926 = vmatpush1.msra.mxu0 %v1605_v17  ;;  %v1182_v17 = vld [vmem:[%s1507_s25 + $0x40] sm:$0xff] }
 0x3c0   : > { %927 = vmatprep.subr.mxu0 %v1611_v18 }
 0x3c1   : > { %928 = vmatpush1.msra.mxu0 %v1617_v19 }
 0x3c2   : > { %929 = vmatprep.subr.mxu0 %v1623_v20 }
 0x3c3   : > { %930 = vmatpush1.msra.mxu0 %v1629_v21 }
 0x3c4   : > { %931 = vmatprep.subr.mxu0 %v1635_v22 }
 0x3c5   : > { %932 = vmatpush1.msra.mxu0 %v1641_v23 }
 0x3c6   : > { %933 = vmatprep.subr.mxu0 %v1647_v24 }
 0x3c7   : > { %934 = vmatpush1.msra.mxu0 %v1653_v25 }
 0x3c8   : > { %935 = vmatprep.subr.mxu0 %v1659_v26 }
 0x3c9   : > { %936 = vmatpush1.msra.mxu0 %v1665_v27 }
 0x3ca   : > { %937 = vmatprep.subr.mxu0 %v1671_v28  ;;  %v1187_v28 = vld [vmem:[%s1507_s25 + $0x50] sm:$0xff] }
 0x3cb   : > { %938 = vmatpush1.msra.mxu0 %v1677_v29 }
 0x3cc   : > { %939 = vmatprep.subr.mxu0 %v1683_v30 }
 0x3cd   : > { %940 = vmatpush1.msra.mxu0 %v1689_v31 }
 0x3ce   : > { %941 = vmatprep.subr.mxu0 %v1695_v32 }
 0x3cf   : > { %942 = vmatpush1.msra.mxu0 %v1701_v33 }
 0x470   : > { %v761_v2 = vpop.f32.mrf.mxu0 }
 0x471   : > { %v766_v13 = vadd.f32 %v1180_v12, %v761_v2 }
 0x472   : > { %v763_v4 = vpop.f32.mrf.mxu0 }
 0x473   : > { %v773_v5 = vadd.f32 %v1181_v3, %v763_v4  ;;  %v1183_v14 = vmul.f32 -1.442695, %v766_v13 }
 0x475   : > { %v1184_v6 = vmul.f32 -1.442695, %v773_v5 }
 0x477   : > { %1434 = vpow2.f32 %v1184_v6 }
 0x484   : > { %v1435_v7 = vpop.eup %1434 }
 0x485   : > { %v777_v8 = vadd.f32 1.0, %v1435_v7 }
 0x487   : > { %1436 = vrcp.f32 %v777_v8 }
 0x488   : > { %1438 = vpow2.f32 %v1183_v14 }
 0x494   : > { %v1437_v9 = vpop.eup %1436 }
 0x495   : > { %v780_v10 = vmul.f32 %v1437_v9, %v1973_v1  ;;  %v1439_v15 = vpop.eup %1438 }
 0x496   : > { %v770_v16 = vadd.f32 1.0, %v1439_v15 }
 0x497   : > { %1366 = vmatmul.mubr.f32.vlgmr.msra.gmra.mxu1 %v780_v10 }
 0x498   : > { %1369 = vmatpush3.msra.mxu1 %v1746_v35  ;;  %1400 = vmatprep.mubr.msk.f32.mxu1 %vm1465_vm0, %v2066_v51  ;;  %1440 = vrcp.f32 %v770_v16 }
 0x499   : > { %1370 = vmatprep.subr.mxu1 %v2066_v51 }
 0x49a   : > { %1371 = vmatpush3.msra.mxu1 %v1753_v36 }
 0x49b   : > { %1372 = vmatprep.subr.mxu1 %v2066_v51 }
 0x49c   : > { %1373 = vmatpush3.msra.mxu1 %v1760_v37  ;;  %v1186_v37 = vld [vmem:[%s1507_s25 + $0x48] sm:$0xff] }
 0x49d   : > { %1374 = vmatprep.subr.mxu1 %v2066_v51 }
 0x49e   : > { %1375 = vmatpush3.msra.mxu1 %v1767_v38 }
 0x49f   : > { %1376 = vmatprep.subr.mxu1 %v2066_v51 }
 0x4a0   : > { %1377 = vmatpush3.msra.mxu1 %v1774_v39 }
 0x4a1   : > { %1378 = vmatprep.subr.mxu1 %v2066_v51 }
 0x4a2   : > { %1379 = vmatpush3.msra.mxu1 %v1781_v40 }
 0x4a3   : > { %1380 = vmatprep.subr.mxu1 %v2066_v51 }
 0x4a4   : > { %1381 = vmatpush3.msra.mxu1 %v1788_v41 }
 0x4a5   : > { %1382 = vmatprep.subr.mxu1 %v2066_v51  ;;  %v1441_v21 = vpop.eup %1440 }
 0x4a6   : > { %1383 = vmatpush3.msra.mxu1 %v1795_v42  ;;  %v870_v22 = vsub.f32 1.0, %v1441_v21  ;;  %v869_v24 = vmul.f32 %v1441_v21, %v1973_v1  ;;  %v1188_v42 = vld [vmem:[%s1507_s25 + $0x58] sm:$0xff] }
 0x4a7   : > { %1384 = vmatprep.subr.mxu1 %v2066_v51 }
 0x4a8   : > { %1385 = vmatpush3.msra.mxu1 %v1802_v43 }
 0x4a9   : > { %1386 = vmatprep.subr.mxu1 %v2066_v51 }
 0x4aa   : > { %1387 = vmatpush3.msra.mxu1 %v1807_v44 }
 0x4ab   : > { %1388 = vmatprep.subr.mxu1 %v2066_v51 }
 0x4ac   : > { %1389 = vmatpush3.msra.mxu1 %v1816_v45 }
 0x4ad   : > { %1390 = vmatprep.subr.mxu1 %v2066_v51 }
 0x4ae   : > { %1391 = vmatpush3.msra.mxu1 %v1823_v46 }
 0x4af   : > { %1392 = vmatprep.subr.mxu1 %v2066_v51 }
 0x4b0   : > { %1393 = vmatpush3.msra.mxu1 %v1830_v47 }
 0x4b1   : > { %1394 = vmatprep.subr.mxu1 %v2066_v51 }
 0x4b2   : > { %1395 = vmatpush3.msra.mxu1 %v1837_v48 }
 0x4b3   : > { %1396 = vmatprep.subr.mxu1 %v2066_v51 }
 0x4b4   : > { %1397 = vmatpush3.msra.mxu1 %v1844_v49 }
 0x4b5   : > { %1398 = vmatprep.subr.mxu1 %v2066_v51 }
 0x4b6   : > { %1399 = vmatpush3.msra.mxu1 %v2068_v11 }
 0x557   : > { %v863_v18 = vpop.f32.mrf.mxu1 }
 0x558   : > { %v867_v19 = vadd.f32 %v1182_v17, %v863_v18 }
 0x559   : > { %v1367_v20 = vpop.f32.mrf.mxu1 }
 0x55a   : > { %1442 = vtanh.f32 %v867_v19 }
 0x567   : > { %v1443_v23 = vpop.eup %1442 }
 0x568   : > { %v871_v25 = vmul.f32 %v1443_v23, %v870_v22 }
 0x56a   : > { %v872_v26 = vadd.f32 %v871_v25, %v869_v24 }
 0x56c   : > { %1185 = vst [vmem:[%s1502_s22 + $0x10] sm:$0xff] %v872_v26  ;;  %976 = vmatmul.mubr.f32.vlgmr.msra.gmra.mxu0 %v872_v26 }
 0x62c   : > { %v977_v27 = vpop.f32.mrf.mxu0 }
 0x62d   : > { %v982_v38 = vadd.f32 %v1186_v37, %v977_v27 }
 0x62e   : > { %v979_v29 = vpop.f32.mrf.mxu0 }
 0x62f   : > { %v989_v30 = vadd.f32 %v1187_v28, %v979_v29  ;;  %v1189_v39 = vmul.f32 -1.442695, %v982_v38 }
 0x631   : > { %v1190_v31 = vmul.f32 -1.442695, %v989_v30 }
 0x633   : > { %1444 = vpow2.f32 %v1190_v31 }
 0x640   : > { %v1445_v32 = vpop.eup %1444 }
 0x641   : > { %v993_v33 = vadd.f32 1.0, %v1445_v32 }
 0x643   : > { %1446 = vrcp.f32 %v993_v33 }
 0x644   : > { %1448 = vpow2.f32 %v1189_v39 }
 0x650   : > { %v1447_v35 = vpop.eup %1446 }
 0x651   : > { %v996_v36 = vmul.f32 %v1447_v35, %v872_v26  ;;  %v1449_v40 = vpop.eup %1448 }
 0x652   : > { %v986_v41 = vadd.f32 1.0, %v1449_v40 }
 0x653   : > { %1401 = vmatmul.mubr.f32.vlgmr.msra.gmra.mxu1 %v996_v36 }
 0x654   : > { %1450 = vrcp.f32 %v986_v41 }
 0x661   : > { %v1451_v46 = vpop.eup %1450 }
 0x662   : > { %v1086_v47 = vsub.f32 1.0, %v1451_v46  ;;  %v1085_v49 = vmul.f32 %v1451_v46, %v872_v26 }
 0x713   : > { %v1079_v43 = vpop.f32.mrf.mxu1 }
 0x714   : > { %v1083_v44 = vadd.f32 %v1188_v42, %v1079_v43 }
 0x715   : > { %v1402_v45 = vpop.f32.mrf.mxu1 }
 0x716   : > { %1452 = vtanh.f32 %v1083_v44 }
 0x723   : > { %v1453_v48 = vpop.eup %1452 }
 0x724   : > { %v1087_v51 = vmul.f32 %v1453_v48, %v1086_v47 }
 0x726   : > { %v1088_v34 = vadd.f32 %v1087_v51, %v1085_v49 }
 0x728   : > { %1191 = vst [vmem:[%s1502_s22 + $0x18] sm:$0xff] %v1088_v34  ;;  %1091 = vst [vmem:[#allocation2] sm:$0xff] %v1088_v34 }
 0x729 PF: > { %s14_s15 = sadd.s32 1, %s1462_s15  }
 0x72a   : > { %p11_p5 = scmp.ge.s32.totalorder %s14_s15, 5  }
 0x72c   :  { %13 = sbr.rel (!%p11_p5) target bundleno = 1 (0x1), region = 114 }
 0x731   :  { %1114 = vsyncmov [#allocation3] }
 0x734   :  { %s1115_s25 = vpop.sfrf %1114 }
 0x735   :  { %p1194_p6 = scmp.ne.s32.totalorder %s1115_s25, 0 }
 0x737   :  { %1119 = shalt.err (%p1194_p6)  }

</bundles_post_ra>
